<compile_context>
chip_gen: v6e
topology: v6e:2x2x1
jax: 0.10.0
libtpu: 0.0.40
codegen_flags: <defaults>
</compile_context>

<pallas_src>
import functools

import jax
import jax.numpy as jnp
from jax.experimental import pallas as pl
from jax.experimental.pallas import tpu as pltpu

_VMEM_LIMIT = 32 * 1024 * 1024  # explicit scoped-VMEM budget (safe on v5e/v6e/v7x)


def _round_up(x, m):
    return ((x + m - 1) // m) * m


def _largest_divisor_leq(n, cap):
    for d in range(min(n, cap), 0, -1):
        if n % d == 0:
            return d
    return 1


# --------------------------- matmul + bias + act --------------------------- #
def _make_matmul_kernel(activation):
    def kernel(a_ref, b_ref, bias_ref, o_ref, acc_ref):
        k = pl.program_id(2)

        @pl.when(k == 0)
        def _():
            acc_ref[...] = jnp.zeros_like(acc_ref)

        acc_ref[...] += jnp.dot(a_ref[...], b_ref[...],
                                preferred_element_type=jnp.float32)

        @pl.when(k == pl.num_programs(2) - 1)
        def _():
            r = acc_ref[...] + bias_ref[...]          # f32 epilogue
            if activation == "relu":
                r = jnp.maximum(r, 0.0)
            elif activation == "tanh":
                r = jnp.tanh(r)
            o_ref[...] = r.astype(o_ref.dtype)

    return kernel


def _pick_tk(k_dim):
    # full-K single block when it fits; otherwise a 128-aligned divisor of K
    if k_dim <= 2048:
        return k_dim
    for tk in range(2048, 127, -128):
        if k_dim % tk == 0:
            return tk
    return k_dim


def matmul_bias_act(a, b, bias, n_valid, activation="none",
                    out_dtype=jnp.bfloat16):
    """act(a @ b + bias)[:, :n_valid].  a:[M,K] (bf16), b:[K,Np] bf16, bias:[1,Np] f32."""
    a = a.astype(jnp.bfloat16)
    M, K = a.shape
    K2, Np = b.shape
    assert K == K2 and bias.shape == (1, Np)

    if M % 256 == 0:
        tm = 256
    elif M % 128 == 0:
        tm = 128
    else:
        tm = min(256, _round_up(M, 8))
    Mp = _round_up(M, tm)
    if Mp != M:
        a = jnp.pad(a, ((0, Mp - M), (0, 0)))

    if Np < 128:
        tn = Np                      # full (narrow) output dim
    elif M <= 8 and Np % 512 == 0:
        tn = 512                     # FC layers: long lane-dense weight stream
    elif Np % 256 == 0:
        tn = 256
    else:
        tn = 128
    tk = _pick_tk(K)

    grid = (Mp // tm, Np // tn, K // tk)
    out = pl.pallas_call(
        _make_matmul_kernel(activation),
        out_shape=jax.ShapeDtypeStruct((Mp, Np), out_dtype),
        grid_spec=pltpu.PrefetchScalarGridSpec(
            num_scalar_prefetch=0,
            grid=grid,
            in_specs=[
                pl.BlockSpec((tm, tk), lambda i, j, k: (i, k)),
                pl.BlockSpec((tk, tn), lambda i, j, k: (k, j)),
                pl.BlockSpec((1, tn), lambda i, j, k: (0, j)),
            ],
            out_specs=pl.BlockSpec((tm, tn), lambda i, j, k: (i, j)),
            scratch_shapes=[pltpu.VMEM((tm, tn), jnp.float32)],
        ),
        compiler_params=pltpu.CompilerParams(
            dimension_semantics=("parallel", "parallel", "arbitrary"),
            vmem_limit_bytes=_VMEM_LIMIT),
    )(a, b, bias)
    return out[:M, :n_valid]


# ------------------------ fused 3x3 conv (no im2col) ----------------------- #
def _conv3x3_kernel(x_ref, w_ref, bias_ref, o_ref, *, tr, w_p, c_in):
    # x_ref: whole padded image of this batch element, flattened to (Hp*Wp, Cin)
    # o_ref: (tr*Wp, tn) block of the (flattened, width-padded) output
    r = pl.program_id(1)
    mb = tr * w_p
    base = r * mb
    acc = jnp.zeros((mb, o_ref.shape[1]), jnp.float32)
    for ky in range(3):
        for kx in range(3):
            a = x_ref[pl.ds(base + ky * w_p + kx, mb), :]      # shifted row window
            wt = w_ref[(ky * 3 + kx) * c_in:(ky * 3 + kx + 1) * c_in, :]
            acc = acc + jnp.dot(a, wt, preferred_element_type=jnp.float32)
    o_ref[...] = jnp.maximum(acc + bias_ref[...], 0.0).astype(o_ref.dtype)


def _im2col_3x3(x):
    # Only used for the Cin==1 stem conv (9x amplification of a 1-channel image is tiny).
    B, H, W, C = x.shape
    xp = jnp.pad(x, ((0, 0), (1, 1), (1, 1), (0, 0)))
    cols = [xp[:, ky:ky + H, kx:kx + W, :] for ky in range(3) for kx in range(3)]
    return jnp.concatenate(cols, axis=-1).reshape(B * H * W, 9 * C)


def conv3x3_relu(x, w_packed, bias, cout):
    """3x3 / stride 1 / pad 1 conv + ReLU.  x: [B,H,W,C] bf16 -> [B,H,W,cout] bf16."""
    B, H, W, C = x.shape
    if C < 8:   # stem conv (Cin=1): patch matrix is tiny, use the matmul kernel
        out = matmul_bias_act(_im2col_3x3(x), w_packed, bias, cout,
                              activation="relu", out_dtype=jnp.bfloat16)
        return out.reshape(B, H, W, cout)

    w_p = _round_up(W + 2, 8)             # padded row pitch (lane-friendly)
    hp = H + 3                            # 1 top pad + 1 bottom pad + 1 overrun guard row
    tr = _largest_divisor_leq(H, max(1, 2048 // w_p))   # output rows per grid step
    mb = tr * w_p
    n_r = H // tr
    tn = cout if cout < 256 else 256
    n_j = cout // tn

    xp = jnp.pad(x, ((0, 0), (1, 2), (1, w_p - W - 1), (0, 0)))   # (B, hp, w_p, C)
    xf = xp.reshape(B * hp * w_p, C)

    kernel = functools.partial(_conv3x3_kernel, tr=tr, w_p=w_p, c_in=C)
    out = pl.pallas_call(
        kernel,
        out_shape=jax.ShapeDtypeStruct((B * H * w_p, cout), jnp.bfloat16),
        grid_spec=pltpu.PrefetchScalarGridSpec(
            num_scalar_prefetch=0,
            grid=(B, n_r, n_j),
            in_specs=[
                # whole padded image of batch b; stays resident across (r, j) steps
                pl.BlockSpec((hp * w_p, C), lambda b, r, j: (b, 0)),
                pl.BlockSpec((9 * C, tn), lambda b, r, j: (0, j)),
                pl.BlockSpec((1, tn), lambda b, r, j: (0, j)),
            ],
            out_specs=pl.BlockSpec((mb, tn), lambda b, r, j: (b * n_r + r, j)),
        ),
        compiler_params=pltpu.CompilerParams(
            dimension_semantics=("parallel", "parallel", "parallel"),
            vmem_limit_bytes=_VMEM_LIMIT),
    )(xf, w_packed, bias)
    # rows are laid out as (B, H, w_p); columns >= W are padding lanes -> drop them
    return out.reshape(B, H, w_p, cout)[:, :, :W, :]


# ------------------- 2x2 / stride 2 "maxpool" convolutions ------------------ #
def _space_to_depth_2x2(x):
    # [B,H,W,C] -> [B*(H/2)*(W/2), 4C]; patch order (ky, kx, c); zero size amplification.
    B, H, W, C = x.shape
    x = x.reshape(B, H // 2, 2, W // 2, 2, C)
    x = jnp.transpose(x, (0, 1, 3, 2, 4, 5))
    return x.reshape(B * (H // 2) * (W // 2), 4 * C)


def conv2x2s2_relu(x, w_packed, bias, cout):
    B, H, W, C = x.shape
    out = matmul_bias_act(_space_to_depth_2x2(x), w_packed, bias, cout,
                          activation="relu", out_dtype=jnp.bfloat16)
    return out.reshape(B, H // 2, W // 2, cout)


# ----------------------------------- model --------------------------------- #
def _conv_specs(width):
    w = width   # original module: width = 64
    return [
        (1, w, 3), (w, w, 3), (w, 2 * w, 2),
        (2 * w, 2 * w, 3), (2 * w, 2 * w, 3), (2 * w, 4 * w, 2),
        (4 * w, 4 * w, 3), (4 * w, 4 * w, 3), (4 * w, 4 * w, 3), (4 * w, 4 * w, 3),
        (4 * w, 8 * w, 2),
        (8 * w, 8 * w, 3), (8 * w, 8 * w, 3), (8 * w, 8 * w, 3), (8 * w, 8 * w, 3),
        (8 * w, 8 * w, 2),
        (8 * w, 8 * w, 3), (8 * w, 8 * w, 3), (8 * w, 8 * w, 3), (8 * w, 8 * w, 3),
        (8 * w, 8 * w, 2),
    ]


def init_params(key, dim=1000, width=64, hidden=4096, spatial=224):
    """Weights pre-packed once for the kernels: conv w -> [k*k*Cin, Cout] bf16,
    linear w -> [K, Np] bf16 (N padded to a lane multiple), biases [1, N] f32."""
    params = {"conv": [], "linear": []}
    for cin, cout, k in _conv_specs(width):
        key, wk = jax.random.split(key)
        scale = (2.0 / (k * k * cin)) ** 0.5
        w = jax.random.normal(wk, (k, k, cin, cout), jnp.float32) * scale
        params["conv"].append({
            "k": k, "cout": cout,
            "w": w.reshape(k * k * cin, cout).astype(jnp.bfloat16),
            "b": jnp.zeros((1, cout), jnp.float32),
        })
    flat_in = (spatial // 32) * (spatial // 32) * 8 * width
    for fin, fout in [(flat_in, hidden), (hidden, hidden), (hidden, dim)]:
        key, wk = jax.random.split(key)
        scale = (2.0 / fin) ** 0.5
        w = jax.random.normal(wk, (fin, fout), jnp.float32) * scale
        np_ = _round_up(fout, 128) if fout >= 128 else fout
        w = jnp.pad(w, ((0, 0), (0, np_ - fout))).astype(jnp.bfloat16)
        params["linear"].append({"w": w, "b": jnp.zeros((1, np_), jnp.float32),
                                 "n": fout})
    return params


def encoder_forward(params, x_nchw):
    # x_nchw: [B, 1, S, S] with S a multiple of 32 (original module: S=224).
    x = jnp.transpose(x_nchw, (0, 2, 3, 1)).astype(jnp.bfloat16)   # NCHW -> NHWC bf16
    for layer in params["conv"]:
        if layer["k"] == 3:
            x = conv3x3_relu(x, layer["w"], layer["b"], layer["cout"])
        else:
            x = conv2x2s2_relu(x, layer["w"], layer["b"], layer["cout"])
    B = x.shape[0]
    # PyTorch x.flatten(1) flattens in (C, H, W) order -> go through NCHW first.
    x = jnp.transpose(x, (0, 3, 1, 2)).reshape(B, -1)
    l0, l1, l2 = params["linear"]
    # TODO(synk): nn.Dropout(p=0.5) is identity in eval mode; train-mode RNG dropout not implemented.
    x = matmul_bias_act(x, l0["w"], l0["b"], l0["n"], activation="relu",
                        out_dtype=jnp.bfloat16)
    x = matmul_bias_act(x, l1["w"], l1["b"], l1["n"], activation="relu",
                        out_dtype=jnp.bfloat16)
    x = matmul_bias_act(x, l2["w"], l2["b"], l2["n"], activation="tanh",
                        out_dtype=jnp.float32)
    return x


if __name__ == "__main__":
    key = jax.random.PRNGKey(0)
    pkey, xkey = jax.random.split(key)
    # Small width-scaled configuration (original: width=64, hidden=4096, dim=1000,
    # spatial=224) so the full 21-conv + 3-FC pipeline runs quickly even in
    # interpret mode; the kernels handle the full-size configuration unchanged.
    width, hidden, dim, spatial, batch = 8, 512, 32, 32, 2
    params = init_params(pkey, dim=dim, width=width, hidden=hidden, spatial=spatial)
    x = jax.random.normal(xkey, (batch, 1, spatial, spatial), jnp.float32)
    out = encoder_forward(params, x)
    out = jax.block_until_ready(out)
    assert out.shape == (batch, dim), out.shape
    assert bool(jnp.all(jnp.isfinite(out)))
    print("KERNEL_OK")
</pallas_src>

<mosaic_0001>
module attributes {stable_mosaic.version = 11 : i64} {
  func.func @kernel(%arg0: i32, %arg1: i32, %arg2: i32, %arg3: memref<256x9xbf16, #tpu.memory_space<vmem>>, %arg4: memref<9x8xbf16, #tpu.memory_space<vmem>>, %arg5: memref<1x8xf32, #tpu.memory_space<vmem>>, %arg6: memref<256x8xbf16, #tpu.memory_space<vmem>>, %arg7: memref<256x8xf32, #tpu.memory_space<vmem>>) attributes {dimension_semantics = [#tpu.dimension_semantics<parallel>, #tpu.dimension_semantics<parallel>, #tpu.dimension_semantics<arbitrary>], iteration_bounds = array<i64: 8, 1, 1>, scalar_prefetch = 0 : i64, scratch_operands = 1 : i64, tpu.core_type = #tpu.core_type<tc>, window_params = [{transform_indices = @transform_0, window_bounds = array<i64: 256, 9>}, {transform_indices = @transform_1, window_bounds = array<i64: 9, 8>}, {transform_indices = @transform_2, window_bounds = array<i64: 1, 8>}, {transform_indices = @transform_3, window_bounds = array<i64: 256, 8>}]} {
    %c0_i32 = arith.constant 0 : i32
    %0 = arith.cmpi eq, %arg2, %c0_i32 : i32
    %1 = arith.extui %0 : i1 to i32
    %c0_i32_0 = arith.constant 0 : i32
    %2 = arith.cmpi ne, %1, %c0_i32_0 : i32
    scf.if %2 {
      %cst_10 = arith.constant 0.000000e+00 : f32
      %12 = vector.broadcast %cst_10 : f32 to vector<256x8xf32>
      %c0_11 = arith.constant 0 : index
      %c0_12 = arith.constant 0 : index
      %13 = vector.load %arg7[%c0_11, %c0_12] : memref<256x8xf32, #tpu.memory_space<vmem>>, vector<256x8xf32>
      tpu.vector_store %arg7[%c0_11, %c0_12], %12 {strides = array<i32>} : memref<256x8xf32, #tpu.memory_space<vmem>>, vector<256x8xf32>,
    } else {
    }
    %c0 = arith.constant 0 : index
    %c0_1 = arith.constant 0 : index
    %3 = vector.load %arg7[%c0, %c0_1] : memref<256x8xf32, #tpu.memory_space<vmem>>, vector<256x8xf32>
    %c0_2 = arith.constant 0 : index
    %c0_3 = arith.constant 0 : index
    %4 = vector.load %arg3[%c0_2, %c0_3] : memref<256x9xbf16, #tpu.memory_space<vmem>>, vector<256x9xbf16>
    %c0_4 = arith.constant 0 : index
    %c0_5 = arith.constant 0 : index
    %5 = vector.load %arg4[%c0_4, %c0_5] : memref<9x8xbf16, #tpu.memory_space<vmem>>, vector<9x8xbf16>
    %cst = arith.constant dense<0.000000e+00> : vector<256x8xf32>
    %6 = tpu.matmul %4, %5, %cst {dimension_numbers = #tpu.dot_dimension_numbers<[1], [0], [0], [1], [0, 0, 1, 1], [], []>} : vector<256x9xbf16>, vector<9x8xbf16>, vector<256x8xf32> -> vector<256x8xf32>
    %7 = arith.addf %3, %6 : vector<256x8xf32>
    %c0_6 = arith.constant 0 : index
    %c0_7 = arith.constant 0 : index
    %8 = vector.load %arg7[%c0_6, %c0_7] : memref<256x8xf32, #tpu.memory_space<vmem>>, vector<256x8xf32>
    tpu.vector_store %arg7[%c0_6, %c0_7], %7 {strides = array<i32>} : memref<256x8xf32, #tpu.memory_space<vmem>>, vector<256x8xf32>,
    %c0_i32_8 = arith.constant 0 : i32
    %9 = arith.cmpi eq, %arg2, %c0_i32_8 : i32
    %10 = arith.extui %9 : i1 to i32
    %c0_i32_9 = arith.constant 0 : i32
    %11 = arith.cmpi ne, %10, %c0_i32_9 : i32
    scf.if %11 {
      %c0_10 = arith.constant 0 : index
      %c0_11 = arith.constant 0 : index
      %12 = vector.load %arg7[%c0_10, %c0_11] : memref<256x8xf32, #tpu.memory_space<vmem>>, vector<256x8xf32>
      %c0_12 = arith.constant 0 : index
      %c0_13 = arith.constant 0 : index
      %13 = vector.load %arg5[%c0_12, %c0_13] : memref<1x8xf32, #tpu.memory_space<vmem>>, vector<1x8xf32>
      %14 = vector.broadcast %13 : vector<1x8xf32> to vector<256x8xf32>
      %15 = arith.addf %12, %14 : vector<256x8xf32>
      %cst_14 = arith.constant 0.000000e+00 : f32
      %16 = vector.broadcast %cst_14 : f32 to vector<256x8xf32>
      %17 = arith.maximumf %15, %16 : vector<256x8xf32>
      %18 = arith.truncf %17 : vector<256x8xf32> to vector<256x8xbf16>
      %c0_15 = arith.constant 0 : index
      %c0_16 = arith.constant 0 : index
      %19 = vector.load %arg6[%c0_15, %c0_16] : memref<256x8xbf16, #tpu.memory_space<vmem>>, vector<256x8xbf16>
      tpu.vector_store %arg6[%c0_15, %c0_16], %18 {strides = array<i32>} : memref<256x8xbf16, #tpu.memory_space<vmem>>, vector<256x8xbf16>,
    } else {
    }
    return
  }
  func.func @transform_0(%arg0: i32, %arg1: i32, %arg2: i32) -> (i32, i32) {
    %c0_i32 = arith.constant 0 : i32
    return %arg0, %arg2 : i32, i32
  }
  func.func @transform_1(%arg0: i32, %arg1: i32, %arg2: i32) -> (i32, i32) {
    %c0_i32 = arith.constant 0 : i32
    return %arg2, %arg1 : i32, i32
  }
  func.func @transform_2(%arg0: i32, %arg1: i32, %arg2: i32) -> (i32, i32) {
    %c0_i32 = arith.constant 0 : i32
    %c0_i32_0 = arith.constant 0 : i32
    return %c0_i32, %arg1 : i32, i32
  }
  func.func @transform_3(%arg0: i32, %arg1: i32, %arg2: i32) -> (i32, i32) {
    %c0_i32 = arith.constant 0 : i32
    return %arg0, %arg1 : i32, i32
  }
}

</mosaic_0001>

<bundles_post_ra>
// kernel: tpu_custom_call.1
= control target key start
LH: loop header
LB: loop body
LE: loop exit
PB: predicated region body
PF: predicated region fallthrough
CT: control target
= control target key end

     0   :  { %s1361_s12 = smov 0   ;;  %s1363_s13 = smov 0   ;;  %s1618_s0 = inlined_call_operand.vmem [shape: bf16[2048,9], index: 0, kind: input, shape index: {}]   ;;  %s1619_s1 = inlined_call_operand.vmem [shape: bf16[9,8], index: 1, kind: input, shape index: {}]   ;;  %s1620_s2 = inlined_call_operand.vmem [shape: f32[1,8], index: 2, kind: input, shape index: {}]   ;;  %s1621_s3 = inlined_call_operand.vmem [shape: bf16[2048,8], index: 3, kind: output, shape index: {}]  }
   0x1   :  { %s1365_s14 = smov 0  }
   0x2 LB: > { %s32_s15 = sadd.s32 1, %s1333_s13  ;;  %p1114_p0 = scmp.ge.s32.totalorder %s1337_s14, 1  ;;  %s1337_s14 = sphi %s1365_s14, %s13_s14   ;;  %s1333_s13 = sphi %s1363_s13, %s1624_s13   ;;  %s1329_s12 = sphi %s1361_s12, %s1623_s12  }
   0x3   : > { %p34_p1 = scmp.ge.s32.totalorder %s32_s15, 8  ;;  %p188_p2 = scmp.lt.s32.totalorder %s1337_s14, 9 }
   0x5   : > { %s1626_s15 = smov (%p34_p1, %s32_s15), 0  ;;  %p189_p3 = pnand %p1114_p0, %p188_p2 }
   0x6   : > { %s1115_s18 = sshll.u32 (!%p189_p3), %s1329_s12, 5 }
   0x7   : > { %192 = sbr.rel (%p189_p3) target bundleno = 264 (0x108), region = 32  ;;  %p1387_p4 = scmp.lt.s32.totalorder (!%p189_p3), %s1115_s18, 255 }
   0xc   : > { %v1298_v0 = vld [vmem:[%s1619_s1] sm:$0x1f]   ;;  %vm497_vm0 = vcmask 1043456   ;;  %vm498_vm1 = vcmask 1044480   ;;  %v1339_v1 = vmov 65535   ;;  %vm264_vm2 = vcmask 64512  }
   0xd   : > { %v499_v2 = vsel %vm497_vm0, 4294967295, %v1339_v1  ;;  %v1340_v4 = vmov 0.0   ;;  %s1628_s18 = smov (!%p1387_p4, %s1115_s18), 255  ;;  %vm448_vm3 = vcmask 72704   ;;  %v1477_v47 = vld [vmem:[%s1620_s2] ss:$0 sm:$0xff] }
   0xe   : > { %v500_v3 = vsel %vm498_vm1, %v499_v2, 0  ;;  %267 = vst.msk [vmem:[#allocation2 + $0x10] sm:$0xff] %vm264_vm2, %v1340_v4  ;;  %265 = vst.msk [vmem:[#allocation2] sm:$0xff] %vm264_vm2, %v1340_v4  ;;  %s1116_s20 = sshll.u32 %s1628_s18, 2  ;;  %vm964_vm4 = vcmask 60416  }
   0xf   : > { %266 = vst.msk [vmem:[#allocation2 + $0x8] sm:$0xff] %vm264_vm2, %v1340_v4  ;;  %268 = vst.msk [vmem:[#allocation2 + $0x18] sm:$0xff] %vm264_vm2, %v1340_v4  ;;  %v502_v5 = vand.u32 %v1298_v0, %v500_v3  ;;  %s1435_s23 = scalar_lea.vmem %s1618_s0, %s1116_s20  ;;  %s1493_s28 = scalar_lea.vmem %s1621_s3, %s1116_s20 }
  0x10   : > { %269 = vst.msk [vmem:[#allocation2 + $0x20] sm:$0xff] %vm264_vm2, %v1340_v4  ;;  %270 = vst.msk [vmem:[#allocation2 + $0x28] sm:$0xff] %vm264_vm2, %v1340_v4  ;;  %v1299_v6 = vld [vmem:[%s1435_s23] sm:$0xff]   ;;  %v1301_v8 = vld [vmem:[%s1435_s23 + $0x8] sm:$0xff]  }
  0x11   : > { %271 = vst.msk [vmem:[#allocation2 + $0x30] sm:$0xff] %vm264_vm2, %v1340_v4  ;;  %272 = vst.msk [vmem:[#allocation2 + $0x38] sm:$0xff] %vm264_vm2, %v1340_v4  ;;  %1236 = vmatprep.subr.bf16.mxu0 %v502_v5  ;;  %1270 = vmatprep.subr.bf16.mxu1 %v502_v5  ;;  %v1300_v7 = vld [vmem:[%s1435_s23 + $0x40] sm:$0xff]   ;;  %v1302_v9 = vld [vmem:[%s1435_s23 + $0x48] sm:$0xff]  }
  0x12   : > { %273 = vst.msk [vmem:[#allocation2 + $0x40] sm:$0xff] %vm264_vm2, %v1340_v4  ;;  %274 = vst.msk [vmem:[#allocation2 + $0x48] sm:$0xff] %vm264_vm2, %v1340_v4  ;;  %1237 = vmatpush3.bf16.msra.mxu0 %v502_v5  ;;  %1271 = vmatpush3.bf16.msra.mxu1 %v502_v5  ;;  %v1303_v10 = vld [vmem:[%s1435_s23 + $0x10] sm:$0xff]   ;;  %v1305_v12 = vld [vmem:[%s1435_s23 + $0x18] sm:$0xff]  }
  0x13   : > { %275 = vst.msk [vmem:[#allocation2 + $0x50] sm:$0xff] %vm264_vm2, %v1340_v4  ;;  %276 = vst.msk [vmem:[#allocation2 + $0x58] sm:$0xff] %vm264_vm2, %v1340_v4  ;;  %1238 = vmatprep.mubr.msk.bf16.mxu0 %vm448_vm3, %v1299_v6  ;;  %1254 = vmatprep.mubr.msk.bf16.mxu1 %vm448_vm3, %v1300_v7  ;;  %v1304_v11 = vld [vmem:[%s1435_s23 + $0x50] sm:$0xff]   ;;  %v1306_v13 = vld [vmem:[%s1435_s23 + $0x58] sm:$0xff]  }
  0x14   : > { %277 = vst.msk [vmem:[#allocation2 + $0x60] sm:$0xff] %vm264_vm2, %v1340_v4  ;;  %278 = vst.msk [vmem:[#allocation2 + $0x68] sm:$0xff] %vm264_vm2, %v1340_v4  ;;  %v1307_v14 = vld [vmem:[%s1435_s23 + $0x20] sm:$0xff]   ;;  %v1309_v16 = vld [vmem:[%s1435_s23 + $0x28] sm:$0xff]  }
  0x15   : > { %279 = vst.msk [vmem:[#allocation2 + $0x70] sm:$0xff] %vm264_vm2, %v1340_v4  ;;  %280 = vst.msk [vmem:[#allocation2 + $0x78] sm:$0xff] %vm264_vm2, %v1340_v4  ;;  %1239 = vmatmul.mubr.msk.bf16.vlgmr.msra.gmra.mxu0 %vm448_vm3, %v1301_v8  ;;  %1255 = vmatmul.mubr.msk.bf16.vlgmr.msra.gmra.mxu1 %vm448_vm3, %v1302_v9  ;;  %v1308_v15 = vld [vmem:[%s1435_s23 + $0x60] sm:$0xff]   ;;  %v1310_v17 = vld [vmem:[%s1435_s23 + $0x68] sm:$0xff]  }
  0x16   : > { %281 = vst.msk [vmem:[#allocation2 + $0x80] sm:$0xff] %vm264_vm2, %v1340_v4  ;;  %282 = vst.msk [vmem:[#allocation2 + $0x88] sm:$0xff] %vm264_vm2, %v1340_v4  ;;  %1242 = vmatprep.mubr.msk.bf16.mxu0 %vm448_vm3, %v1303_v10  ;;  %1258 = vmatprep.mubr.msk.bf16.mxu1 %vm448_vm3, %v1304_v11  ;;  %v1311_v18 = vld [vmem:[%s1435_s23 + $0x30] sm:$0xff]   ;;  %v1313_v20 = vld [vmem:[%s1435_s23 + $0x38] sm:$0xff]  }
  0x17   : > { %283 = vst.msk [vmem:[#allocation2 + $0x90] sm:$0xff] %vm264_vm2, %v1340_v4  ;;  %284 = vst.msk [vmem:[#allocation2 + $0x98] sm:$0xff] %vm264_vm2, %v1340_v4  ;;  %v1312_v19 = vld [vmem:[%s1435_s23 + $0x70] sm:$0xff]   ;;  %v1314_v21 = vld [vmem:[%s1435_s23 + $0x78] sm:$0xff]  }
  0x18   : > { %285 = vst.msk [vmem:[#allocation2 + $0xa0] sm:$0xff] %vm264_vm2, %v1340_v4  ;;  %286 = vst.msk [vmem:[#allocation2 + $0xa8] sm:$0xff] %vm264_vm2, %v1340_v4  ;;  %v299_v22 = vld [vmem:[#allocation2 + $0x10] sm:$0xff]  ;;  %v297_v25 = vld [vmem:[#allocation2] sm:$0xff] }
  0x19   : > { %287 = vst.msk [vmem:[#allocation2 + $0xb0] sm:$0xff] %vm264_vm2, %v1340_v4  ;;  %288 = vst.msk [vmem:[#allocation2 + $0xb8] sm:$0xff] %vm264_vm2, %v1340_v4  ;;  %v300_v31 = vld [vmem:[#allocation2 + $0x18] sm:$0xff]  ;;  %v298_v37 = vld [vmem:[#allocation2 + $0x8] sm:$0xff] }
  0x1a   : > { %289 = vst.msk [vmem:[#allocation2 + $0xc0] sm:$0xff] %vm264_vm2, %v1340_v4  ;;  %290 = vst.msk [vmem:[#allocation2 + $0xc8] sm:$0xff] %vm264_vm2, %v1340_v4  ;;  %v303_v43 = vld [vmem:[#allocation2 + $0x30] sm:$0xff]  ;;  %v301_v50 = vld [vmem:[#allocation2 + $0x20] sm:$0xff] }
  0x1b   : > { %291 = vst.msk [vmem:[#allocation2 + $0xd0] sm:$0xff] %vm264_vm2, %v1340_v4  ;;  %292 = vst.msk [vmem:[#allocation2 + $0xd8] sm:$0xff] %vm264_vm2, %v1340_v4  ;;  %v304_v57 = vld [vmem:[#allocation2 + $0x38] sm:$0xff]  ;;  %v302_v3 = vld [vmem:[#allocation2 + $0x28] sm:$0xff] }
  0x1c   : > { %293 = vst.msk [vmem:[#allocation2 + $0xe0] sm:$0xff] %vm264_vm2, %v1340_v4  ;;  %294 = vst.msk [vmem:[#allocation2 + $0xe8] sm:$0xff] %vm264_vm2, %v1340_v4 }
  0x1d   : > { %295 = vst.msk [vmem:[#allocation2 + $0xf0] sm:$0xff] %vm264_vm2, %v1340_v4  ;;  %296 = vst.msk [vmem:[#allocation2 + $0xf8] sm:$0xff] %vm264_vm2, %v1340_v4  ;;  %1243 = vmatmul.mubr.msk.bf16.gmra.mxu0 %vm448_vm3, %v1305_v12  ;;  %1259 = vmatmul.mubr.msk.bf16.gmra.mxu1 %vm448_vm3, %v1306_v13  ;;  %v313_v28 = vld [vmem:[#allocation2 + $0x80] sm:$0xff]  ;;  %v314_v40 = vld [vmem:[#allocation2 + $0x88] sm:$0xff] }
  0x1e   : > { %1246 = vmatprep.mubr.msk.bf16.mxu0 %vm448_vm3, %v1307_v14  ;;  %1262 = vmatprep.mubr.msk.bf16.mxu1 %vm448_vm3, %v1308_v15  ;;  %v315_v23 = vld [vmem:[#allocation2 + $0x90] sm:$0xff]  ;;  %v316_v34 = vld [vmem:[#allocation2 + $0x98] sm:$0xff] }
  0x1f   : > { %v317_v53 = vld [vmem:[#allocation2 + $0xa0] sm:$0xff]  ;;  %v318_v9 = vld [vmem:[#allocation2 + $0xa8] sm:$0xff]  ;;  %v307_v15 = vld [vmem:[#allocation2 + $0x50] sm:$0xff] }
  0x20   : > { %v319_v46 = vld [vmem:[#allocation2 + $0xb0] sm:$0xff]  ;;  %v320_v62 = vld [vmem:[#allocation2 + $0xb8] sm:$0xff] }
  0x25   : > { %1247 = vmatmul.mubr.msk.bf16.gmra.mxu0 %vm448_vm3, %v1309_v16  ;;  %1263 = vmatmul.mubr.msk.bf16.gmra.mxu1 %vm448_vm3, %v1310_v17 }
  0x26   : > { %1250 = vmatprep.mubr.msk.bf16.mxu0 %vm448_vm3, %v1311_v18  ;;  %1266 = vmatprep.mubr.msk.bf16.mxu1 %vm448_vm3, %v1312_v19 }
  0x2d   : > { %1251 = vmatmul.mubr.msk.bf16.gmra.mxu0 %vm448_vm3, %v1313_v20  ;;  %1267 = vmatmul.mubr.msk.bf16.gmra.mxu1 %vm448_vm3, %v1314_v21 }
  0xd5   : > { %v1240_v24 = vpop.f32.mrf.mxu0  ;;  %v1256_v27 = vpop.f32.mrf.mxu1 }
  0xd6   : > { %v667_v26 = vadd.f32 %v1240_v24, %v299_v22  ;;  %v683_v29 = vadd.f32 %v1256_v27, %v315_v23  ;;  %v323_v22 = vld [vmem:[#allocation2 + $0xd0] sm:$0xff] }
  0xd7   : > { %v538_v30 = vpop.f32.mrf.mxu0  ;;  %v602_v33 = vpop.f32.mrf.mxu1 }
  0xd8   : > { %700 = vst.msk [vmem:[#allocation2 + $0x10] sm:$0xff] %vm264_vm2, %v667_v26  ;;  %v665_v32 = vadd.f32 %v538_v30, %v297_v25  ;;  %716 = vst.msk [vmem:[#allocation2 + $0x90] sm:$0xff] %vm264_vm2, %v683_v29  ;;  %v681_v35 = vadd.f32 %v602_v33, %v313_v28  ;;  %v305_v29 = vld [vmem:[#allocation2 + $0x40] sm:$0xff] }
  0xd9   : > { %v1241_v36 = vpop.f32.mrf.mxu0  ;;  %v1257_v39 = vpop.f32.mrf.mxu1 }
  0xda   : > { %698 = vst.msk [vmem:[#allocation2] sm:$0xff] %vm264_vm2, %v665_v32  ;;  %v668_v38 = vadd.f32 %v1241_v36, %v300_v31  ;;  %714 = vst.msk [vmem:[#allocation2 + $0x80] sm:$0xff] %vm264_vm2, %v681_v35  ;;  %v684_v41 = vadd.f32 %v1257_v39, %v316_v34  ;;  %v321_v36 = vld [vmem:[#allocation2 + $0xc0] sm:$0xff] }
  0xdb   : > { %v541_v42 = vpop.f32.mrf.mxu0  ;;  %v605_v45 = vpop.f32.mrf.mxu1 }
  0xdc   : > { %701 = vst.msk [vmem:[#allocation2 + $0x18] sm:$0xff] %vm264_vm2, %v668_v38  ;;  %v666_v44 = vadd.f32 %v541_v42, %v298_v37  ;;  %717 = vst.msk [vmem:[#allocation2 + $0x98] sm:$0xff] %vm264_vm2, %v684_v41  ;;  %v682_v48 = vadd.f32 %v605_v45, %v314_v40 }
  0xdd   : > { %v1244_v49 = vpop.f32.mrf.mxu0  ;;  %v1260_v52 = vpop.f32.mrf.mxu1 }
  0xde   : > { %699 = vst.msk [vmem:[#allocation2 + $0x8] sm:$0xff] %vm264_vm2, %v666_v44  ;;  %v671_v51 = vadd.f32 %v1244_v49, %v303_v43  ;;  %715 = vst.msk [vmem:[#allocation2 + $0x88] sm:$0xff] %vm264_vm2, %v682_v48  ;;  %v687_v55 = vadd.f32 %v1260_v52, %v319_v46  ;;  %v308_v43 = vld [vmem:[#allocation2 + $0x58] sm:$0xff] }
  0xdf   : > { %v735_v54 = vld [vmem:[#allocation2 + $0x10] sm:$0xff]  ;;  %v554_v56 = vpop.f32.mrf.mxu0  ;;  %v618_v61 = vpop.f32.mrf.mxu1 }
  0xe0   : > { %v774_v58 = vadd.f32 %v1477_v47, %v735_v54  ;;  %v751_v59 = vld [vmem:[#allocation2 + $0x90] sm:$0xff]  ;;  %704 = vst.msk [vmem:[#allocation2 + $0x30] sm:$0xff] %vm264_vm2, %v671_v51  ;;  %v669_v60 = vadd.f32 %v554_v56, %v301_v50  ;;  %720 = vst.msk [vmem:[#allocation2 + $0xb0] sm:$0xff] %vm264_vm2, %v687_v55  ;;  %v685_v1 = vadd.f32 %v618_v61, %v317_v53  ;;  %v324_v51 = vld [vmem:[#allocation2 + $0xd8] sm:$0xff] }
  0xe1   : > { %v790_v63 = vadd.f32 %v1477_v47, %v751_v59  ;;  %v733_v0 = vld [vmem:[#allocation2] sm:$0xff]  ;;  %v1245_v2 = vpop.f32.mrf.mxu0  ;;  %v1261_v8 = vpop.f32.mrf.mxu1 }
  0xe2   : > { %v806_v4 = vmax.f32 %v774_v58, 0.0  ;;  %v772_v5 = vadd.f32 %v1477_v47, %v733_v0  ;;  %v749_v6 = vld [vmem:[#allocation2 + $0x80] sm:$0xff]  ;;  %702 = vst.msk [vmem:[#allocation2 + $0x20] sm:$0xff] %vm264_vm2, %v669_v60  ;;  %v672_v7 = vadd.f32 %v1245_v2, %v304_v57  ;;  %718 = vst.msk [vmem:[#allocation2 + $0xa0] sm:$0xff] %vm264_vm2, %v685_v1  ;;  %v688_v13 = vadd.f32 %v1261_v8, %v320_v62  ;;  %v306_v58 = vld [vmem:[#allocation2 + $0x48] sm:$0xff] }
  0xe3   : > { %v822_v10 = vmax.f32 %v790_v63, 0.0  ;;  %v788_v11 = vadd.f32 %v1477_v47, %v749_v6  ;;  %v736_v12 = vld [vmem:[#allocation2 + $0x18] sm:$0xff]  ;;  %v557_v14 = vpop.f32.mrf.mxu0  ;;  %v621_v21 = vpop.f32.mrf.mxu1  ;;  %v322_v1 = vld [vmem:[#allocation2 + $0xc8] sm:$0xff]  ;;  %v311_v8 = vld [vmem:[#allocation2 + $0x70] sm:$0xff] }
  0xe4   : > { %v1189_v16 = vpack.c.bf16 %v806_v4, %v806_v4  ;;  %v804_v17 = vmax.f32 %v772_v5, 0.0  ;;  %v775_v18 = vadd.f32 %v1477_v47, %v736_v12  ;;  %v752_v19 = vld [vmem:[#allocation2 + $0x98] sm:$0xff]  ;;  %705 = vst.msk [vmem:[#allocation2 + $0x38] sm:$0xff] %vm264_vm2, %v672_v7  ;;  %v670_v20 = vadd.f32 %v557_v14, %v302_v3  ;;  %721 = vst.msk [vmem:[#allocation2 + $0xb8] sm:$0xff] %vm264_vm2, %v688_v13 }
  0xe5   : > { %v1205_v23 = vpack.c.bf16 %v822_v10, %v822_v10  ;;  %v820_v24 = vmax.f32 %v788_v11, 0.0  ;;  %v791_v25 = vadd.f32 %v1477_v47, %v752_v19  ;;  %v734_v26 = vld [vmem:[#allocation2 + $0x8] sm:$0xff]  ;;  %v686_v27 = vadd.f32 %v621_v21, %v318_v9  ;;  %v1248_v28 = vpop.f32.mrf.mxu0  ;;  %v1264_v35 = vpop.f32.mrf.mxu1 }
  0xe6   : > { %967 = vst.msk [vmem:[%s1493_s28 + $0x8] sm:$0xf] %vm964_vm4, %v1189_v16  ;;  %v1187_v30 = vpack.c.bf16 %v804_v17, %v804_v17  ;;  %v807_v31 = vmax.f32 %v775_v18, 0.0  ;;  %v773_v32 = vadd.f32 %v1477_v47, %v734_v26  ;;  %v750_v33 = vld [vmem:[#allocation2 + $0x88] sm:$0xff]  ;;  %v675_v34 = vadd.f32 %v1248_v28, %v307_v15  ;;  %v327_v15 = vld [vmem:[#allocation2 + $0xf0] sm:$0xff] }
  0xe7   : > { %703 = vst.msk [vmem:[#allocation2 + $0x28] sm:$0xff] %vm264_vm2, %v670_v20  ;;  %v1203_v37 = vpack.c.bf16 %v820_v24, %v820_v24  ;;  %v823_v38 = vmax.f32 %v791_v25, 0.0  ;;  %v789_v39 = vadd.f32 %v1477_v47, %v750_v33  ;;  %v739_v40 = vld [vmem:[#allocation2 + $0x30] sm:$0xff]  ;;  %719 = vst.msk [vmem:[#allocation2 + $0xa8] sm:$0xff] %vm264_vm2, %v686_v27  ;;  %v691_v41 = vadd.f32 %v1264_v35, %v323_v22  ;;  %v570_v42 = vpop.f32.mrf.mxu0  ;;  %v634_v50 = vpop.f32.mrf.mxu1  ;;  %v309_v22 = vld [vmem:[#allocation2 + $0x60] sm:$0xff] }
  0xe8   : > { %983 = vst.msk [vmem:[%s1493_s28 + $0x48] sm:$0xf] %vm964_vm4, %v1205_v23  ;;  %965 = vst.msk [vmem:[%s1493_s28] sm:$0xf] %vm964_vm4, %v1187_v30  ;;  %v1190_v44 = vpack.c.bf16 %v807_v31, %v807_v31  ;;  %v805_v45 = vmax.f32 %v773_v32, 0.0  ;;  %v778_v46 = vadd.f32 %v1477_v47, %v739_v40  ;;  %v755_v48 = vld [vmem:[#allocation2 + $0xb0] sm:$0xff]  ;;  %v673_v49 = vadd.f32 %v570_v42, %v305_v29 }
  0xe9   : > { %708 = vst.msk [vmem:[#allocation2 + $0x50] sm:$0xff] %vm264_vm2, %v675_v34  ;;  %v1206_v52 = vpack.c.bf16 %v823_v38, %v823_v38  ;;  %v821_v53 = vmax.f32 %v789_v39, 0.0  ;;  %v794_v54 = vadd.f32 %v1477_v47, %v755_v48  ;;  %v737_v55 = vld [vmem:[#allocation2 + $0x20] sm:$0xff]  ;;  %724 = vst.msk [vmem:[#allocation2 + $0xd0] sm:$0xff] %vm264_vm2, %v691_v41  ;;  %v689_v56 = vadd.f32 %v634_v50, %v321_v36  ;;  %v1249_v57 = vpop.f32.mrf.mxu0  ;;  %v1265_v0 = vpop.f32.mrf.mxu1  ;;  %v312_v36 = vld [vmem:[#allocation2 + $0x78] sm:$0xff] }
  0xea   : > { %981 = vst.msk [vmem:[%s1493_s28 + $0x40] sm:$0xf] %vm964_vm4, %v1203_v37  ;;  %968 = vst.msk [vmem:[%s1493_s28 + $0xc] sm:$0xf] %vm964_vm4, %v1190_v44  ;;  %v1188_v59 = vpack.c.bf16 %v805_v45, %v805_v45  ;;  %v810_v60 = vmax.f32 %v778_v46, 0.0  ;;  %v776_v61 = vadd.f32 %v1477_v47, %v737_v55  ;;  %v753_v62 = vld [vmem:[#allocation2 + $0xa0] sm:$0xff]  ;;  %v676_v63 = vadd.f32 %v1249_v57, %v308_v43 }
  0xeb   : > { %706 = vst.msk [vmem:[#allocation2 + $0x40] sm:$0xff] %vm264_vm2, %v673_v49  ;;  %v1204_v2 = vpack.c.bf16 %v821_v53, %v821_v53  ;;  %v826_v3 = vmax.f32 %v794_v54, 0.0  ;;  %v792_v4 = vadd.f32 %v1477_v47, %v753_v62  ;;  %v740_v5 = vld [vmem:[#allocation2 + $0x38] sm:$0xff]  ;;  %722 = vst.msk [vmem:[#allocation2 + $0xc0] sm:$0xff] %vm264_vm2, %v689_v56  ;;  %v692_v6 = vadd.f32 %v1265_v0, %v324_v51  ;;  %v573_v7 = vpop.f32.mrf.mxu0  ;;  %v637_v14 = vpop.f32.mrf.mxu1  ;;  %v325_v29 = vld [vmem:[#allocation2 + $0xe0] sm:$0xff] }
  0xec   : > { %984 = vst.msk [vmem:[%s1493_s28 + $0x4c] sm:$0xf] %vm964_vm4, %v1206_v52  ;;  %966 = vst.msk [vmem:[%s1493_s28 + $0x4] sm:$0xf] %vm964_vm4, %v1188_v59  ;;  %v1193_v9 = vpack.c.bf16 %v810_v60, %v810_v60  ;;  %v808_v10 = vmax.f32 %v776_v61, 0.0  ;;  %v779_v11 = vadd.f32 %v1477_v47, %v740_v5  ;;  %v756_v12 = vld [vmem:[#allocation2 + $0xb8] sm:$0xff]  ;;  %v674_v13 = vadd.f32 %v573_v7, %v306_v58 }
  0xed   : > { %709 = vst.msk [vmem:[#allocation2 + $0x58] sm:$0xff] %vm264_vm2, %v676_v63  ;;  %v1209_v16 = vpack.c.bf16 %v826_v3, %v826_v3  ;;  %v824_v17 = vmax.f32 %v792_v4, 0.0  ;;  %v795_v18 = vadd.f32 %v1477_v47, %v756_v12  ;;  %725 = vst.msk [vmem:[#allocation2 + $0xd8] sm:$0xff] %vm264_vm2, %v692_v6  ;;  %v690_v20 = vadd.f32 %v637_v14, %v322_v1  ;;  %v1252_v21 = vpop.f32.mrf.mxu0  ;;  %v1268_v28 = vpop.f32.mrf.mxu1  ;;  %v328_v43 = vld [vmem:[#allocation2 + $0xf8] sm:$0xff]  ;;  %v310_v51 = vld [vmem:[#allocation2 + $0x68] sm:$0xff] }
  0xee   : > { %982 = vst.msk [vmem:[%s1493_s28 + $0x44] sm:$0xf] %vm964_vm4, %v1204_v2  ;;  %v738_v19 = vld [vmem:[#allocation2 + $0x28] sm:$0xff]  ;;  %971 = vst.msk [vmem:[%s1493_s28 + $0x18] sm:$0xf] %vm964_vm4, %v1193_v9  ;;  %v1191_v23 = vpack.c.bf16 %v808_v10, %v808_v10  ;;  %v811_v24 = vmax.f32 %v779_v11, 0.0  ;;  %v679_v27 = vadd.f32 %v1252_v21, %v311_v8  ;;  %v695_v34 = vadd.f32 %v1268_v28, %v327_v15 }
  0xef   : > { %v777_v25 = vadd.f32 %v1477_v47, %v738_v19  ;;  %v754_v26 = vld [vmem:[#allocation2 + $0xa8] sm:$0xff]  ;;  %707 = vst.msk [vmem:[#allocation2 + $0x48] sm:$0xff] %vm264_vm2, %v674_v13  ;;  %v1207_v30 = vpack.c.bf16 %v824_v17, %v824_v17  ;;  %v827_v31 = vmax.f32 %v795_v18, 0.0  ;;  %723 = vst.msk [vmem:[#allocation2 + $0xc8] sm:$0xff] %vm264_vm2, %v690_v20  ;;  %v586_v35 = vpop.f32.mrf.mxu0  ;;  %v650_v42 = vpop.f32.mrf.mxu1 }
  0xf0   : > { %987 = vst.msk [vmem:[%s1493_s28 + $0x58] sm:$0xf] %vm964_vm4, %v1209_v16  ;;  %v793_v32 = vadd.f32 %v1477_v47, %v754_v26  ;;  %v743_v33 = vld [vmem:[#allocation2 + $0x50] sm:$0xff]  ;;  %969 = vst.msk [vmem:[%s1493_s28 + $0x10] sm:$0xf] %vm964_vm4, %v1191_v23  ;;  %v1194_v37 = vpack.c.bf16 %v811_v24, %v811_v24  ;;  %v677_v41 = vadd.f32 %v586_v35, %v309_v22  ;;  %v326_v58 = vld [vmem:[#allocation2 + $0xe8] sm:$0xff] }
  0xf1   : > { %v809_v38 = vmax.f32 %v777_v25, 0.0  ;;  %v782_v39 = vadd.f32 %v1477_v47, %v743_v33  ;;  %v759_v40 = vld [vmem:[#allocation2 + $0xd0] sm:$0xff]  ;;  %712 = vst.msk [vmem:[#allocation2 + $0x70] sm:$0xff] %vm264_vm2, %v679_v27  ;;  %v1210_v44 = vpack.c.bf16 %v827_v31, %v827_v31  ;;  %728 = vst.msk [vmem:[#allocation2 + $0xf0] sm:$0xff] %vm264_vm2, %v695_v34  ;;  %v693_v49 = vadd.f32 %v650_v42, %v325_v29  ;;  %v1253_v50 = vpop.f32.mrf.mxu0  ;;  %v1269_v57 = vpop.f32.mrf.mxu1 }
  0xf2   : > { %985 = vst.msk [vmem:[%s1493_s28 + $0x50] sm:$0xf] %vm964_vm4, %v1207_v30  ;;  %v825_v45 = vmax.f32 %v793_v32, 0.0  ;;  %v798_v46 = vadd.f32 %v1477_v47, %v759_v40  ;;  %v741_v48 = vld [vmem:[#allocation2 + $0x40] sm:$0xff]  ;;  %972 = vst.msk [vmem:[%s1493_s28 + $0x1c] sm:$0xf] %vm964_vm4, %v1194_v37  ;;  %v680_v56 = vadd.f32 %v1253_v50, %v312_v36  ;;  %v696_v63 = vadd.f32 %v1269_v57, %v328_v43 }
  0xf3   : > { %v1192_v52 = vpack.c.bf16 %v809_v38, %v809_v38  ;;  %v814_v53 = vmax.f32 %v782_v39, 0.0  ;;  %v780_v54 = vadd.f32 %v1477_v47, %v741_v48  ;;  %v757_v55 = vld [vmem:[#allocation2 + $0xc0] sm:$0xff]  ;;  %710 = vst.msk [vmem:[#allocation2 + $0x60] sm:$0xff] %vm264_vm2, %v677_v41  ;;  %726 = vst.msk [vmem:[#allocation2 + $0xe0] sm:$0xff] %vm264_vm2, %v693_v49  ;;  %v589_v0 = vpop.f32.mrf.mxu0  ;;  %v653_v6 = vpop.f32.mrf.mxu1 }
  0xf4   : > { %988 = vst.msk [vmem:[%s1493_s28 + $0x5c] sm:$0xf] %vm964_vm4, %v1210_v44  ;;  %v1208_v59 = vpack.c.bf16 %v825_v45, %v825_v45  ;;  %v830_v60 = vmax.f32 %v798_v46, 0.0  ;;  %v796_v61 = vadd.f32 %v1477_v47, %v757_v55  ;;  %v744_v62 = vld [vmem:[#allocation2 + $0x58] sm:$0xff]  ;;  %v678_v5 = vadd.f32 %v589_v0, %v310_v51 }
  0xf5   : > { %970 = vst.msk [vmem:[%s1493_s28 + $0x14] sm:$0xf] %vm964_vm4, %v1192_v52  ;;  %v1197_v1 = vpack.c.bf16 %v814_v53, %v814_v53  ;;  %v812_v2 = vmax.f32 %v780_v54, 0.0  ;;  %v783_v3 = vadd.f32 %v1477_v47, %v744_v62  ;;  %v760_v4 = vld [vmem:[#allocation2 + $0xd8] sm:$0xff]  ;;  %v694_v11 = vadd.f32 %v653_v6, %v326_v58 }
  0xf6   : > { %713 = vst.msk [vmem:[#allocation2 + $0x78] sm:$0xff] %vm264_vm2, %v680_v56  ;;  %v1213_v7 = vpack.c.bf16 %v830_v60, %v830_v60  ;;  %v828_v8 = vmax.f32 %v796_v61, 0.0  ;;  %v799_v9 = vadd.f32 %v1477_v47, %v760_v4  ;;  %v742_v10 = vld [vmem:[#allocation2 + $0x48] sm:$0xff]  ;;  %729 = vst.msk [vmem:[#allocation2 + $0xf8] sm:$0xff] %vm264_vm2, %v696_v63 }
  0xf7   : > { %986 = vst.msk [vmem:[%s1493_s28 + $0x54] sm:$0xf] %vm964_vm4, %v1208_v59  ;;  %975 = vst.msk [vmem:[%s1493_s28 + $0x28] sm:$0xf] %vm964_vm4, %v1197_v1  ;;  %v1195_v12 = vpack.c.bf16 %v812_v2, %v812_v2  ;;  %v815_v13 = vmax.f32 %v783_v3, 0.0  ;;  %v781_v14 = vadd.f32 %v1477_v47, %v742_v10  ;;  %v758_v15 = vld [vmem:[#allocation2 + $0xc8] sm:$0xff] }
  0xf8   : > { %711 = vst.msk [vmem:[#allocation2 + $0x68] sm:$0xff] %vm264_vm2, %v678_v5  ;;  %v1211_v16 = vpack.c.bf16 %v828_v8, %v828_v8  ;;  %v831_v17 = vmax.f32 %v799_v9, 0.0  ;;  %v797_v18 = vadd.f32 %v1477_v47, %v758_v15  ;;  %v747_v19 = vld [vmem:[#allocation2 + $0x70] sm:$0xff]  ;;  %727 = vst.msk [vmem:[#allocation2 + $0xe8] sm:$0xff] %vm264_vm2, %v694_v11 }
  0xf9   : > { %991 = vst.msk [vmem:[%s1493_s28 + $0x68] sm:$0xf] %vm964_vm4, %v1213_v7  ;;  %973 = vst.msk [vmem:[%s1493_s28 + $0x20] sm:$0xf] %vm964_vm4, %v1195_v12  ;;  %v1198_v20 = vpack.c.bf16 %v815_v13, %v815_v13  ;;  %v813_v21 = vmax.f32 %v781_v14, 0.0  ;;  %v786_v22 = vadd.f32 %v1477_v47, %v747_v19  ;;  %v763_v23 = vld [vmem:[#allocation2 + $0xf0] sm:$0xff] }
  0xfa   : > { %989 = vst.msk [vmem:[%s1493_s28 + $0x60] sm:$0xf] %vm964_vm4, %v1211_v16  ;;  %v1214_v24 = vpack.c.bf16 %v831_v17, %v831_v17  ;;  %v829_v25 = vmax.f32 %v797_v18, 0.0  ;;  %v802_v26 = vadd.f32 %v1477_v47, %v763_v23  ;;  %v745_v27 = vld [vmem:[#allocation2 + $0x60] sm:$0xff] }
  0xfb   : > { %976 = vst.msk [vmem:[%s1493_s28 + $0x2c] sm:$0xf] %vm964_vm4, %v1198_v20  ;;  %v1196_v28 = vpack.c.bf16 %v813_v21, %v813_v21  ;;  %v818_v29 = vmax.f32 %v786_v22, 0.0  ;;  %v784_v30 = vadd.f32 %v1477_v47, %v745_v27  ;;  %v761_v31 = vld [vmem:[#allocation2 + $0xe0] sm:$0xff] }
  0xfc   : > { %992 = vst.msk [vmem:[%s1493_s28 + $0x6c] sm:$0xf] %vm964_vm4, %v1214_v24  ;;  %v1212_v32 = vpack.c.bf16 %v829_v25, %v829_v25  ;;  %v834_v33 = vmax.f32 %v802_v26, 0.0  ;;  %v800_v34 = vadd.f32 %v1477_v47, %v761_v31 }
  0xfd   : > { %v748_v35 = vld [vmem:[#allocation2 + $0x78] sm:$0xff]  ;;  %974 = vst.msk [vmem:[%s1493_s28 + $0x24] sm:$0xf] %vm964_vm4, %v1196_v28  ;;  %v1201_v36 = vpack.c.bf16 %v818_v29, %v818_v29  ;;  %v816_v37 = vmax.f32 %v784_v30, 0.0 }
  0xfe   : > { %v787_v38 = vadd.f32 %v1477_v47, %v748_v35  ;;  %v764_v39 = vld [vmem:[#allocation2 + $0xf8] sm:$0xff]  ;;  %990 = vst.msk [vmem:[%s1493_s28 + $0x64] sm:$0xf] %vm964_vm4, %v1212_v32  ;;  %v1217_v40 = vpack.c.bf16 %v834_v33, %v834_v33  ;;  %v832_v41 = vmax.f32 %v800_v34, 0.0 }
  0xff   : > { %v803_v42 = vadd.f32 %v1477_v47, %v764_v39  ;;  %v746_v43 = vld [vmem:[#allocation2 + $0x68] sm:$0xff]  ;;  %979 = vst.msk [vmem:[%s1493_s28 + $0x38] sm:$0xf] %vm964_vm4, %v1201_v36  ;;  %v1199_v44 = vpack.c.bf16 %v816_v37, %v816_v37 }
 0x100   : > { %v819_v45 = vmax.f32 %v787_v38, 0.0  ;;  %v785_v46 = vadd.f32 %v1477_v47, %v746_v43  ;;  %v762_v48 = vld [vmem:[#allocation2 + $0xe8] sm:$0xff]  ;;  %995 = vst.msk [vmem:[%s1493_s28 + $0x78] sm:$0xf] %vm964_vm4, %v1217_v40  ;;  %v1215_v49 = vpack.c.bf16 %v832_v41, %v832_v41 }
 0x101   : > { %v835_v50 = vmax.f32 %v803_v42, 0.0  ;;  %v801_v51 = vadd.f32 %v1477_v47, %v762_v48  ;;  %977 = vst.msk [vmem:[%s1493_s28 + $0x30] sm:$0xf] %vm964_vm4, %v1199_v44 }
 0x102   : > { %v1202_v52 = vpack.c.bf16 %v819_v45, %v819_v45  ;;  %v817_v53 = vmax.f32 %v785_v46, 0.0  ;;  %993 = vst.msk [vmem:[%s1493_s28 + $0x70] sm:$0xf] %vm964_vm4, %v1215_v49 }
 0x103   : > { %v1218_v54 = vpack.c.bf16 %v835_v50, %v835_v50  ;;  %v833_v55 = vmax.f32 %v801_v51, 0.0 }
 0x104   : > { %980 = vst.msk [vmem:[%s1493_s28 + $0x3c] sm:$0xf] %vm964_vm4, %v1202_v52  ;;  %v1200_v56 = vpack.c.bf16 %v817_v53, %v817_v53 }
 0x105   : > { %996 = vst.msk [vmem:[%s1493_s28 + $0x7c] sm:$0xf] %vm964_vm4, %v1218_v54  ;;  %v1216_v57 = vpack.c.bf16 %v833_v55, %v833_v55 }
 0x106   : > { %978 = vst.msk [vmem:[%s1493_s28 + $0x34] sm:$0xf] %vm964_vm4, %v1200_v56 }
 0x107   : > { %994 = vst.msk [vmem:[%s1493_s28 + $0x74] sm:$0xf] %vm964_vm4, %v1216_v57 }
 0x108 PF: > { %s13_s14 = sadd.s32 1, %s1337_s14   ;;  %s1623_s12 = smov %s1333_s13 }
 0x109   : > { %p10_p5 = scmp.ge.s32.totalorder %s13_s14, 10   ;;  %s1624_s13 = smov %s1626_s15 }
 0x10b   :  { %12 = sbr.rel (!%p10_p5) target bundleno = 2 (0x2), region = 76 }

</bundles_post_ra>
